<compile_context>
chip_gen: v7x
topology: tpu7x:2x2x1
jax: 0.10.0
libtpu: 0.0.40
codegen_flags: <defaults>
</compile_context>

<pallas_src>
import jax
import jax.numpy as jnp
from jax.experimental import pallas as pl
from jax.experimental.pallas import tpu as pltpu


_MEGACORE_MIN_B = 32  # below this a single full-extent tile is used


def _round_up(v, m):
    return ((v + m - 1) // m) * m


def _pick_block_b(B, block_b, align):
    """Batch-tile heuristic.

    Large tiles amortize the ~0.35 us per-grid-step overhead; when the
    requested tile covers the whole batch we still split into >= 2 roughly
    even steps (at large B) so v7x's 2 TensorCores both get work.
    """
    if block_b is None:
        block_b = 8192  # perf review: grid-overhead bound -> big tiles
    block_b = max(align, (block_b // align) * align)
    if block_b >= B:
        if B > 2 * align and B > _MEGACORE_MIN_B:
            block_b = _round_up(pl.cdiv(B, 2), align)
        else:
            block_b = B  # single full-extent block (satisfies (8,128) rule)
    return block_b


def _cost(B, in_dim, out_dim, x_dtype, w_dtype):
    xb = jnp.dtype(x_dtype).itemsize
    wb = jnp.dtype(w_dtype).itemsize
    return pl.CostEstimate(
        flops=2 * B * in_dim * out_dim,
        transcendentals=0,
        bytes_accessed=(B * in_dim * xb            # x
                        + in_dim * out_dim * wb    # W
                        + out_dim * wb             # b
                        + B * out_dim * xb),       # y
    )


# ----------------------------------------------------------------------------
# Default row-major path: y = x @ W + b, fused (B, out_dim) output, split in
# the wrapper (no in-kernel lane-32 slice, no cross-lane shuffle).
# ----------------------------------------------------------------------------
def splitnn_kernel(x_ref, w_ref, b_ref, y_ref):
    acc = jnp.dot(x_ref[...], w_ref[...], preferred_element_type=jnp.float32)
    y_ref[...] = (acc + b_ref[...]).astype(y_ref.dtype)


def split_nn_forward(x, w, b, size, *, block_b=None):
    """x: (B, size); w: (size, size+style); b: (1, size+style)."""
    assert x.ndim == 2, "SplitNN expects a 2-D input"
    B, in_dim = x.shape
    in_dim_w, out_dim = w.shape
    assert in_dim == size and in_dim_w == size
    assert b.shape == (1, out_dim)

    blk = _pick_block_b(B, block_b, align=16)
    grid = (pl.cdiv(B, blk),)

    y = pl.pallas_call(
        splitnn_kernel,
        out_shape=jax.ShapeDtypeStruct((B, out_dim), x.dtype),
        grid=grid,
        in_specs=[
            # Activations: tiled over the batch axis.
            pl.BlockSpec((blk, in_dim), lambda i: (i, 0)),
            # Weights / bias: constant index_map -> VMEM-resident across grid.
            pl.BlockSpec((in_dim, out_dim), lambda i: (0, 0)),
            pl.BlockSpec((1, out_dim), lambda i: (0, 0)),
        ],
        out_specs=pl.BlockSpec((blk, out_dim), lambda i: (i, 0)),
        compiler_params=pltpu.CompilerParams(
            dimension_semantics=("parallel",),
        ),
        cost_estimate=_cost(B, in_dim, out_dim, x.dtype, w.dtype),
    )(x, w, b)

    # Split outside the kernel (tiny; handled by XLA).  Matches PyTorch's
    # (x[:, :size], x[:, size:]) exactly.
    return y[:, :size], y[:, size:]


# ----------------------------------------------------------------------------
# Optional lane-dense transposed path: y^T = W^T @ x^T with batch on the lane
# axis; content/style split on a sublane boundary in the wrapper.  Fully
# unmasked stores (no vst.msk) -> best on v5e's single store slot.  Use only
# when the surrounding pipeline already carries the transposed layout.
# ----------------------------------------------------------------------------
def splitnn_lane_dense_kernel(xt_ref, wt_ref, bt_ref, yt_ref):
    acc = jnp.dot(wt_ref[...], xt_ref[...], preferred_element_type=jnp.float32)
    yt_ref[...] = (acc + bt_ref[...]).astype(yt_ref.dtype)


def split_nn_forward_lane_dense(xt, wt, bt, size, *, block_b=None):
    """xt: (size, B); wt: (size+style, size); bt: (size+style, 1).
    Returns (content^T (size, B), style^T (style, B))."""
    assert xt.ndim == 2
    in_dim, B = xt.shape
    out_dim, in_dim_w = wt.shape
    assert in_dim == size and in_dim_w == size
    assert bt.shape == (out_dim, 1)

    blk = _pick_block_b(B, block_b, align=128)
    grid = (pl.cdiv(B, blk),)

    yt = pl.pallas_call(
        splitnn_lane_dense_kernel,
        out_shape=jax.ShapeDtypeStruct((out_dim, B), xt.dtype),
        grid=grid,
        in_specs=[
            pl.BlockSpec((in_dim, blk), lambda i: (0, i)),
            pl.BlockSpec((out_dim, in_dim), lambda i: (0, 0)),
            pl.BlockSpec((out_dim, 1), lambda i: (0, 0)),
        ],
        out_specs=pl.BlockSpec((out_dim, blk), lambda i: (0, i)),
        compiler_params=pltpu.CompilerParams(
            dimension_semantics=("parallel",),
        ),
        cost_estimate=_cost(B, in_dim, out_dim, xt.dtype, wt.dtype),
    )(xt, wt, bt)

    # 32/16 split lands exactly on a sublane boundary (32 % 8 == 0).
    return yt[:size, :], yt[size:, :]


if __name__ == "__main__":
    # Small, deterministic configuration.
    size = 32            # content size
    style_vec_size = 16  # style size
    batch = 8
    out_dim = size + style_vec_size

    key = jax.random.PRNGKey(0)
    kx, kw, kb, kx2 = jax.random.split(key, 4)

    # Deterministic init mimicking nn.Linear's uniform(-1/sqrt(in), 1/sqrt(in)).
    bound = 1.0 / jnp.sqrt(jnp.float32(size))
    w = jax.random.uniform(kw, (size, out_dim), jnp.float32, -bound, bound)
    b = jax.random.uniform(kb, (1, out_dim), jnp.float32, -bound, bound)
    x = jax.random.normal(kx, (batch, size), jnp.float32)

    # --- f32 path (tight correctness check) ---
    content, style = split_nn_forward(x, w, b, size)
    content, style = jax.block_until_ready((content, style))
    y_ref = x @ w + b
    assert content.shape == (batch, size)
    assert style.shape == (batch, style_vec_size)
    assert jnp.allclose(content, y_ref[:, :size], atol=1e-5, rtol=1e-5)
    assert jnp.allclose(style, y_ref[:, size:], atol=1e-5, rtol=1e-5)

    # --- bf16 params/activations, f32 accumulate (deployment path) ---
    x_bf = x.astype(jnp.bfloat16)
    w_bf = w.astype(jnp.bfloat16)
    b_bf = b.astype(jnp.bfloat16)
    c_bf, s_bf = split_nn_forward(x_bf, w_bf, b_bf, size)
    c_bf, s_bf = jax.block_until_ready((c_bf, s_bf))
    y_bf_ref = (jnp.dot(x_bf, w_bf, preferred_element_type=jnp.float32)
                + b_bf.astype(jnp.float32)).astype(jnp.bfloat16)
    assert jnp.allclose(c_bf.astype(jnp.float32),
                        y_bf_ref[:, :size].astype(jnp.float32),
                        atol=2e-2, rtol=2e-2)
    assert jnp.allclose(s_bf.astype(jnp.float32),
                        y_bf_ref[:, size:].astype(jnp.float32),
                        atol=2e-2, rtol=2e-2)

    # --- batch-tiled grid path: default heuristic (2 even steps) and an
    #     explicit small tile with a partial edge tile ---
    batch2 = 300
    x2 = jax.random.normal(kx2, (batch2, size), jnp.float32)
    y2_ref = x2 @ w + b

    c2a, s2a = split_nn_forward(x2, w, b, size)            # heuristic: 2 steps
    c2b, s2b = split_nn_forward(x2, w, b, size, block_b=128)  # 3 steps, edge tile
    (c2a, s2a, c2b, s2b) = jax.block_until_ready((c2a, s2a, c2b, s2b))
    for c2, s2 in ((c2a, s2a), (c2b, s2b)):
        assert c2.shape == (batch2, size) and s2.shape == (batch2, style_vec_size)
        assert jnp.allclose(c2, y2_ref[:, :size], atol=1e-5, rtol=1e-5)
        assert jnp.allclose(s2, y2_ref[:, size:], atol=1e-5, rtol=1e-5)

    # --- lane-dense transposed path (batch on lane axis, unmasked stores) ---
    xt = x.T                      # (size, B)
    wt = w.T                      # (out_dim, size)
    bt = b.T                      # (out_dim, 1)
    ct, st = split_nn_forward_lane_dense(xt, wt, bt, size)
    ct, st = jax.block_until_ready((ct, st))
    assert ct.shape == (size, batch) and st.shape == (style_vec_size, batch)
    assert jnp.allclose(ct, y_ref[:, :size].T, atol=1e-5, rtol=1e-5)
    assert jnp.allclose(st, y_ref[:, size:].T, atol=1e-5, rtol=1e-5)

    # lane-dense with a multi-step grid and partial edge tile
    ct2, st2 = split_nn_forward_lane_dense(x2.T, wt, bt, size)
    ct2, st2 = jax.block_until_ready((ct2, st2))
    assert jnp.allclose(ct2, y2_ref[:, :size].T, atol=1e-5, rtol=1e-5)
    assert jnp.allclose(st2, y2_ref[:, size:].T, atol=1e-5, rtol=1e-5)

    print("KERNEL_OK")
</pallas_src>

<mosaic_0001>
module attributes {stable_mosaic.version = 11 : i64} {
  func.func @splitnn_kernel(%arg0: i32, %arg1: memref<8x32xf32, #tpu.memory_space<vmem>>, %arg2: memref<32x48xf32, #tpu.memory_space<vmem>>, %arg3: memref<1x48xf32, #tpu.memory_space<vmem>>, %arg4: memref<8x48xf32, #tpu.memory_space<vmem>>) attributes {dimension_semantics = [#tpu.dimension_semantics<parallel>], iteration_bounds = array<i64: 1>, scalar_prefetch = 0 : i64, scratch_operands = 0 : i64, tpu.core_type = #tpu.core_type<tc>, window_params = [{transform_indices = @transform_0, window_bounds = array<i64: 8, 32>}, {pipeline_mode = #tpu.pipeline_mode<synchronous>, transform_indices = @transform_1, window_bounds = array<i64: 32, 48>}, {pipeline_mode = #tpu.pipeline_mode<synchronous>, transform_indices = @transform_2, window_bounds = array<i64: 1, 48>}, {transform_indices = @transform_3, window_bounds = array<i64: 8, 48>}]} {
    %c0 = arith.constant 0 : index
    %c0_0 = arith.constant 0 : index
    %0 = vector.load %arg1[%c0, %c0_0] : memref<8x32xf32, #tpu.memory_space<vmem>>, vector<8x32xf32>
    %c0_1 = arith.constant 0 : index
    %c0_2 = arith.constant 0 : index
    %1 = vector.load %arg2[%c0_1, %c0_2] : memref<32x48xf32, #tpu.memory_space<vmem>>, vector<32x48xf32>
    %cst = arith.constant dense<0.000000e+00> : vector<8x48xf32>
    %2 = tpu.matmul %0, %1, %cst {dimension_numbers = #tpu.dot_dimension_numbers<[1], [0], [0], [1], [0, 0, 1, 1], [], []>} : vector<8x32xf32>, vector<32x48xf32>, vector<8x48xf32> -> vector<8x48xf32>
    %c0_3 = arith.constant 0 : index
    %c0_4 = arith.constant 0 : index
    %3 = vector.load %arg3[%c0_3, %c0_4] : memref<1x48xf32, #tpu.memory_space<vmem>>, vector<1x48xf32>
    %4 = vector.broadcast %3 : vector<1x48xf32> to vector<8x48xf32>
    %5 = arith.addf %2, %4 : vector<8x48xf32>
    %c0_5 = arith.constant 0 : index
    %c0_6 = arith.constant 0 : index
    %6 = vector.load %arg4[%c0_5, %c0_6] : memref<8x48xf32, #tpu.memory_space<vmem>>, vector<8x48xf32>
    tpu.vector_store %arg4[%c0_5, %c0_6], %5 {strides = array<i32>} : memref<8x48xf32, #tpu.memory_space<vmem>>, vector<8x48xf32>,
    return
  }
  func.func @transform_0(%arg0: i32) -> (i32, i32) {
    %c0_i32 = arith.constant 0 : i32
    %c0_i32_0 = arith.constant 0 : i32
    return %arg0, %c0_i32 : i32, i32
  }
  func.func @transform_1(%arg0: i32) -> (i32, i32) {
    %c0_i32 = arith.constant 0 : i32
    %c0_i32_0 = arith.constant 0 : i32
    %c0_i32_1 = arith.constant 0 : i32
    return %c0_i32, %c0_i32_0 : i32, i32
  }
  func.func @transform_2(%arg0: i32) -> (i32, i32) {
    %c0_i32 = arith.constant 0 : i32
    %c0_i32_0 = arith.constant 0 : i32
    %c0_i32_1 = arith.constant 0 : i32
    return %c0_i32, %c0_i32_0 : i32, i32
  }
  func.func @transform_3(%arg0: i32) -> (i32, i32) {
    %c0_i32 = arith.constant 0 : i32
    %c0_i32_0 = arith.constant 0 : i32
    return %arg0, %c0_i32 : i32, i32
  }
}

</mosaic_0001>

<bundles_post_ra>
// kernel: tpu_custom_call.1
= control target key start
LH: loop header
LB: loop body
LE: loop exit
PB: predicated region body
PF: predicated region fallthrough
CT: control target
= control target key end

     0   :  { %8 = vsyncpa [#allocation3], 0  ;;  %s323_s0 = inlined_call_operand.hbm [shape: f32[8,32], index: 0, kind: input, shape index: {}]   ;;  %s324_s1 = inlined_call_operand.hbm [shape: f32[32,48], index: 1, kind: input, shape index: {}]   ;;  %s325_s2 = inlined_call_operand.vmem [shape: f32[1,48], index: 2, kind: input, shape index: {}]   ;;  %s326_s3 = inlined_call_operand.hbm [shape: f32[8,48], index: 3, kind: output, shape index: {}]  }
   0x1   :  { %9 = vsyncpa [#allocation6], 0 }
   0x2   :  { %10 = vsyncpa [#allocation4], 0  ;;  %s249_s12 = smov [#allocation2]   ;;  %s250_s14 = smov [#allocation5]  }
   0x3   :  { %s17_s13 = sshll.u32 %s249_s12, 4  ;;  %s26_s15 = sshll.u32 %s250_s14, 4  ;;  %s18_s13 = int_to_ptr.vmem [resolvable:$true] %s17_s13  ;;  %s277_s15 = int_to_ptr.vmem [resolvable:$true] %s26_s15 }
   0x4   :  { %s177_s18 = scalar_lea.hbm %s323_s0, 128 }
   0x5   :  { %p178_p0 = scmp.ne.s32.totalorder %s323_s0, %s177_s18  ;;  %p181_p1 = scmp.lt.u32.totalorder %s177_s18, %s323_s0 }
   0x7   :  { %p183_p2 = pnand %p181_p1, %p178_p0 }
   0x9   :  { %186 = shalt.err (!%p183_p2)
}
   0xa   :  { %s187_s23 = scalar_lea.vmem %s18_s13, 128  ;;  %p192_p4 = scmp.lt.s32.totalorder %s18_s13, %s18_s13 }
   0xb   :  { %p188_p3 = scmp.ne.s32.totalorder %s18_s13, %s187_s23  ;;  %p193_p5 = scmp.lt.s32.totalorder %s187_s23, %s187_s23 }
   0xd   :  { %p194_p6 = por %p193_p5, %p192_p4 }
   0xf   :  { %p195_p7 = pnand %p194_p6, %p188_p3 }
  0x11   :  { %198 = shalt.err (!%p195_p7)
}
  0x12   :  { %20 = dma.hbm_to_vmem [thread:$0]  %s323_s0, 128, %s18_s13, [#allocation3]  }
  0x13   :  { %s199_s28 = scalar_lea.hbm %s324_s1, 512 }
  0x14   :  { %p200_p8 = scmp.ne.s32.totalorder %s324_s1, %s199_s28  ;;  %p203_p9 = scmp.lt.u32.totalorder %s199_s28, %s324_s1 }
  0x16   :  { %p205_p10 = pnand %p203_p9, %p200_p8 }
  0x18   :  { %208 = shalt.err (!%p205_p10)
}
  0x19   :  { %s209_s6 = scalar_lea.vmem %s277_s15, 512  ;;  %p214_p12 = scmp.lt.s32.totalorder %s277_s15, %s277_s15 }
  0x1a   :  { %p210_p11 = scmp.ne.s32.totalorder %s277_s15, %s209_s6  ;;  %p215_p13 = scmp.lt.s32.totalorder %s209_s6, %s209_s6 }
  0x1c   :  { %p216_p0 = por %p215_p13, %p214_p12 }
  0x1e   :  { %p217_p1 = pnand %p216_p0, %p210_p11 }
  0x20   :  { %220 = shalt.err (!%p217_p1)
}
  0x21   :  { %s251_s0 = smov 128   ;;  %s252_s7 = smov 8  }
  0x22   :  { %32 = dma.hbm_to_vmem [thread:$0]  %s324_s1, 512, %s277_s15, [#allocation6], %s251_s0, %s251_s0, %s252_s7  }
  0x23   :  { %243 = dma.done.wait [#allocation3], 128  }
  0x24   :  { %244 = vsyncadd [#allocation3], 4294967168 }
  0x25   :  { %245 = dma.done.wait [#allocation6], 512  }
  0x26   :  { %246 = vsyncadd [#allocation6], 4294966784  ;;  %v253_v0 = vmov 0.0|0.0   ;;  %vm254_vm0 = vmmov 0   ;;  %v255_v1 = vmov 0.0   ;;  %v42_v2 = vld [vmem:[#allocation5] sm:$0xff] }
  0x27   :  { %163 = vmatprep.subr.bf16.mxu0 %v253_v0  ;;  %160 = vmatprep.mubr.msk.f32.mxu0 %vm254_vm0, %v255_v1  ;;  %v43_v3 = vld [vmem:[#allocation5 + $0x8] sm:$0xff]  ;;  %v44_v4 = vld [vmem:[#allocation5 + $0x10] sm:$0xff]  ;;  %v45_v6 = vld [vmem:[#allocation5 + $0x18] sm:$0xff]  ;;  %vm53_vm1 = vcmask 261120   ;;  %s256_s11 = smov [#allocation7]   ;;  %vm127_vm2 = vcmask 392192  }
  0x28   :  { %v164_v5 = vpack.c.bf16 %v43_v3, %v42_v2  ;;  %v167_v7 = vpack.c.bf16 %v45_v6, %v44_v4  ;;  %v41_v8 = vld [vmem:[#allocation2] sm:$0xff]  ;;  %s135_s12 = sshll.u32 %s256_s11, 4  ;;  %s136_s12 = int_to_ptr.vmem [resolvable:$true] %s135_s12 }
  0x29   :  { %v145_v9 = vld [vmem:[%s325_s2] ss:$0 sm:$0xff]  ;;  %s221_s13 = scalar_lea.vmem %s136_s12, 128  ;;  %p226_p3 = scmp.lt.s32.totalorder %s136_s12, %s136_s12 }
  0x2a   :  { %165 = vmatpush3.bf16.msra.mxu0 %v164_v5  ;;  %p222_p2 = scmp.ne.s32.totalorder %s136_s12, %s221_s13  ;;  %p227_p4 = scmp.lt.s32.totalorder %s221_s13, %s221_s13 }
  0x2b   :  { %166 = vmatprep.subr.bf16.mxu0 %v253_v0 }
  0x2c   :  { %p228_p5 = por %p227_p4, %p226_p3 }
  0x2e   :  { %168 = vmatpush3.bf16.msra.mxu0 %v167_v7  ;;  %p229_p6 = pnand %p228_p5, %p222_p2 }
  0x31   :  { %161 = vmatmul.mubr.msk.f32.vlgmr.msra.gmra.mrb[0].mxu0 %vm53_vm1, %v41_v8 }
 0x104   :  { %v123_v10 = vpop.f32.mrb[0].mxu0 }
 0x105   :  { %v124_v11 = vadd.f32 %v145_v9, %v123_v10  ;;  %v162_v12 = vpop.f32.mrb[1].mxu0 }
 0x107   :  { %128 = vst.msk [vmem:[#allocation7] sm:$0xff] %vm127_vm2, %v124_v11 }
 0x108   :  { %232 = shalt.err (!%p229_p6)
}
 0x109   :  { %s233_s16 = scalar_lea.hbm %s326_s3, 128 }
 0x10a   :  { %p234_p7 = scmp.ne.s32.totalorder %s326_s3, %s233_s16  ;;  %p237_p8 = scmp.lt.u32.totalorder %s233_s16, %s326_s3 }
 0x10c   :  { %p239_p9 = pnand %p237_p8, %p234_p7 }
 0x10e   :  { %242 = shalt.err (!%p239_p9)
}
 0x10f   :  { %138 = dma.vmem_to_hbm [thread:$0]  %s136_s12, 128, %s326_s3, [#allocation4]  }
 0x110   :  { %247 = dma.done.wait [#allocation4], 128  }
 0x111   :  { %248 = vsyncadd [#allocation4], 4294967168 }
 0x112   :  { %142 = vsyncpa [#allocation3], 1 }
 0x113   :  { %143 = vsyncpa [#allocation6], 1 }
 0x114   :  { %144 = vsyncpa [#allocation4], 1 }

</bundles_post_ra>
